<compile_context>
chip_gen: v6e
topology: v6e:2x2x1
jax: 0.10.0
libtpu: 0.0.40
codegen_flags: <defaults>
</compile_context>

<pallas_src>
import jax
import jax.numpy as jnp
from jax.experimental import pallas as pl
from jax.experimental.pallas import tpu as pltpu

IN_FEATURES = 512
OUT_FEATURES = 384


def _linear_kernel(x_ref, w_ref, b_ref, o_ref):
    # x_ref: (tm, 512)  w_ref: (512, 384) resident  b_ref: (1, 384) f32
    # o_ref: (tm, 384)
    x = x_ref[...]
    w = w_ref[...]
    if x.dtype != w.dtype:
        # Low-precision compute path: cast the tile in VMEM (no HBM pass).
        x = x.astype(w.dtype)
    acc = jnp.dot(x, w, preferred_element_type=jnp.float32)
    o_ref[...] = (acc + b_ref[...]).astype(o_ref.dtype)


def _round_up(v, m):
    return ((v + m - 1) // m) * m


def dimensionality_reducer(x, weight_t, bias, *, out_dtype=None):
    """y = x @ weight_t + bias.

    x        : [B, 512]   streamed as-is (no wrapper pad / cast passes)
    weight_t : [512, 384] (= W^T). Pass a pre-cast, cached bf16 copy for the
               low-precision fast path; accumulation is always f32.
    bias     : [384]
    """
    B, K = x.shape
    assert K == IN_FEATURES
    N = OUT_FEATURES
    if out_dtype is None:
        out_dtype = x.dtype

    x_bytes = jnp.dtype(x.dtype).itemsize
    o_bytes = jnp.dtype(out_dtype).itemsize
    w_bytes = jnp.dtype(weight_t.dtype).itemsize

    # Sublane alignment of the streamed (x / out) tiles: 16 rows for 16-bit
    # dtypes (sublane packing), 8 rows for 32-bit.
    row_align = 16 if min(x_bytes, o_bytes) <= 2 else 8
    # Tile cap keeps double-buffered x/out tiles + resident weight <= ~9 MiB:
    # fits v5e's 16 MiB default scoped VMEM (v6e/v7x default 32 MiB).
    tm_cap = 2048 if max(x_bytes, o_bytes) <= 2 else 1024

    if B <= 512:
        # One grid step; pad only up to the sublane multiple (Pallas read-pads
        # and write-masks the ragged final block, rows >= B are never stored).
        tm = min(_round_up(B, row_align), tm_cap)
    else:
        # >= 2 grid steps so dimension_semantics=("parallel",) can shard the
        # batch across both v7x TensorCores; tile sized so the per-call padding
        # is < row_align rows (no pad-to-tm blowup, e.g. B=600 no longer
        # rounds to 1024).
        nblocks = max(2, pl.cdiv(B, tm_cap))
        tm = _round_up(pl.cdiv(B, nblocks), row_align)
    grid = (pl.cdiv(B, tm),)

    bias2d = bias.reshape(1, N).astype(jnp.float32)

    cost = pl.CostEstimate(
        flops=2 * B * K * N,
        transcendentals=0,
        bytes_accessed=(B * K * x_bytes      # x
                        + K * N * w_bytes    # weight
                        + N * 4              # bias (f32)
                        + B * N * o_bytes),  # y
    )

    # TODO(synk): for tiny batches (B <~ 64) hit repeatedly, a plain XLA dot or
    # a cross-call weight prefetch (P10) avoids the per-call weight DMA
    # dominating latency; not needed for this self-contained demo.
    return pl.pallas_call(
        _linear_kernel,
        out_shape=jax.ShapeDtypeStruct((B, N), out_dtype),
        grid_spec=pltpu.PrefetchScalarGridSpec(
            num_scalar_prefetch=0,
            grid=grid,
            in_specs=[
                # x tile: streamed, double-buffered; ragged last block handled
                # by Pallas (read-padded, write-masked) -> no wrapper jnp.pad.
                pl.BlockSpec((tm, K), lambda i: (i, 0)),
                # Weight & bias: constant index maps -> resident, single-buffered.
                pl.BlockSpec((K, N), lambda i: (0, 0),
                             pipeline_mode=pl.Buffered(1)),
                pl.BlockSpec((1, N), lambda i: (0, 0),
                             pipeline_mode=pl.Buffered(1)),
            ],
            out_specs=pl.BlockSpec((tm, N), lambda i: (i, 0)),
        ),
        compiler_params=pltpu.CompilerParams(
            dimension_semantics=("parallel",),
        ),
        cost_estimate=cost,
    )(x, weight_t, bias2d)


if __name__ == "__main__":
    key = jax.random.PRNGKey(0)
    kx, kw, kb = jax.random.split(key, 3)

    B = 8  # small batch of 512-d vectors to reduce to 384-d
    x = jax.random.normal(kx, (B, IN_FEATURES), dtype=jnp.float32)

    # Deterministic parameter init (mimics nn.Linear uniform(-1/sqrt(fan_in))).
    bound = 1.0 / (IN_FEATURES ** 0.5)
    weight = jax.random.uniform(
        kw, (OUT_FEATURES, IN_FEATURES), minval=-bound, maxval=bound,
        dtype=jnp.float32)
    bias = jax.random.uniform(
        kb, (OUT_FEATURES,), minval=-bound, maxval=bound, dtype=jnp.float32)
    # PyTorch weight is [384, 512]; store its transpose [512, 384] for the MXU.
    weight_t = jnp.asarray(weight.T)
    # Cached low-precision weight: cast ONCE outside the call (the kernel never
    # re-casts it per invocation).
    weight_t_bf16 = weight_t.astype(jnp.bfloat16)

    y_ref = x @ weight_t + bias

    # Full-precision streamed path (module numerics; f32 accumulation).
    y = jax.block_until_ready(dimensionality_reducer(x, weight_t, bias))
    assert y.shape == (B, OUT_FEATURES)
    assert jnp.allclose(y, y_ref, atol=3e-2, rtol=3e-2)

    # Ragged batch + cached-bf16-weight fast path: x streamed f32 (no wrapper
    # pad/cast), cast to bf16 inside the kernel, f32 accumulation, f32 output.
    B2 = 5
    y2 = jax.block_until_ready(
        dimensionality_reducer(x[:B2], weight_t_bf16, bias,
                               out_dtype=jnp.float32))
    assert y2.shape == (B2, OUT_FEATURES)
    assert jnp.allclose(y2, y_ref[:B2], atol=5e-2, rtol=5e-2)

    print("KERNEL_OK")
</pallas_src>

<mosaic_0001>
module attributes {stable_mosaic.version = 11 : i64} {
  func.func @_linear_kernel(%arg0: i32, %arg1: memref<8x512xf32, #tpu.memory_space<vmem>>, %arg2: memref<512x384xf32, #tpu.memory_space<vmem>>, %arg3: memref<1x384xf32, #tpu.memory_space<vmem>>, %arg4: memref<8x384xf32, #tpu.memory_space<vmem>>) attributes {dimension_semantics = [#tpu.dimension_semantics<parallel>], iteration_bounds = array<i64: 1>, scalar_prefetch = 0 : i64, scratch_operands = 0 : i64, tpu.core_type = #tpu.core_type<tc>, window_params = [{transform_indices = @transform_0, window_bounds = array<i64: 8, 512>}, {pipeline_mode = #tpu.pipeline_mode<synchronous>, transform_indices = @transform_1, window_bounds = array<i64: 512, 384>}, {pipeline_mode = #tpu.pipeline_mode<synchronous>, transform_indices = @transform_2, window_bounds = array<i64: 1, 384>}, {transform_indices = @transform_3, window_bounds = array<i64: 8, 384>}]} {
    %c0 = arith.constant 0 : index
    %c0_0 = arith.constant 0 : index
    %0 = vector.load %arg1[%c0, %c0_0] : memref<8x512xf32, #tpu.memory_space<vmem>>, vector<8x512xf32>
    %c0_1 = arith.constant 0 : index
    %c0_2 = arith.constant 0 : index
    %1 = vector.load %arg2[%c0_1, %c0_2] : memref<512x384xf32, #tpu.memory_space<vmem>>, vector<512x384xf32>
    %cst = arith.constant dense<0.000000e+00> : vector<8x384xf32>
    %2 = tpu.matmul %0, %1, %cst {dimension_numbers = #tpu.dot_dimension_numbers<[1], [0], [0], [1], [0, 0, 1, 1], [], []>} : vector<8x512xf32>, vector<512x384xf32>, vector<8x384xf32> -> vector<8x384xf32>
    %c0_3 = arith.constant 0 : index
    %c0_4 = arith.constant 0 : index
    %3 = vector.load %arg3[%c0_3, %c0_4] : memref<1x384xf32, #tpu.memory_space<vmem>>, vector<1x384xf32>
    %4 = vector.broadcast %3 : vector<1x384xf32> to vector<8x384xf32>
    %5 = arith.addf %2, %4 : vector<8x384xf32>
    %c0_5 = arith.constant 0 : index
    %c0_6 = arith.constant 0 : index
    %6 = vector.load %arg4[%c0_5, %c0_6] : memref<8x384xf32, #tpu.memory_space<vmem>>, vector<8x384xf32>
    tpu.vector_store %arg4[%c0_5, %c0_6], %5 {strides = array<i32>} : memref<8x384xf32, #tpu.memory_space<vmem>>, vector<8x384xf32>,
    return
  }
  func.func @transform_0(%arg0: i32) -> (i32, i32) {
    %c0_i32 = arith.constant 0 : i32
    %c0_i32_0 = arith.constant 0 : i32
    return %arg0, %c0_i32 : i32, i32
  }
  func.func @transform_1(%arg0: i32) -> (i32, i32) {
    %c0_i32 = arith.constant 0 : i32
    %c0_i32_0 = arith.constant 0 : i32
    %c0_i32_1 = arith.constant 0 : i32
    return %c0_i32, %c0_i32_0 : i32, i32
  }
  func.func @transform_2(%arg0: i32) -> (i32, i32) {
    %c0_i32 = arith.constant 0 : i32
    %c0_i32_0 = arith.constant 0 : i32
    %c0_i32_1 = arith.constant 0 : i32
    return %c0_i32, %c0_i32_0 : i32, i32
  }
  func.func @transform_3(%arg0: i32) -> (i32, i32) {
    %c0_i32 = arith.constant 0 : i32
    %c0_i32_0 = arith.constant 0 : i32
    return %arg0, %c0_i32 : i32, i32
  }
}

</mosaic_0001>

<bundles_post_ra>
// kernel: tpu_custom_call.1
= control target key start
LH: loop header
LB: loop body
LE: loop exit
PB: predicated region body
PF: predicated region fallthrough
CT: control target
= control target key end

     0   :  { %8 = vsyncpa [#allocation3], 0  ;;  %s749_s0 = inlined_call_operand.hbm [shape: f32[8,512], index: 0, kind: input, shape index: {}]   ;;  %s750_s1 = inlined_call_operand.hbm [shape: f32[512,384], index: 1, kind: input, shape index: {}]   ;;  %s751_s2 = inlined_call_operand.vmem [shape: f32[1,384], index: 2, kind: input, shape index: {}]   ;;  %s752_s3 = inlined_call_operand.hbm [shape: f32[8,384], index: 3, kind: output, shape index: {}]  }
   0x1   :  { %9 = vsyncpa [#allocation6], 0 }
   0x2   :  { %10 = vsyncpa [#allocation4], 0  ;;  %s696_s12 = smov [#allocation2]   ;;  %s697_s14 = smov [#allocation5]  }
   0x3   :  { %s17_s13 = sshll.u32 %s696_s12, 4  ;;  %s26_s15 = sshll.u32 %s697_s14, 4  ;;  %s18_s13 = int_to_ptr.vmem [resolvable:$true] %s17_s13  ;;  %s27_s15 = int_to_ptr.vmem [resolvable:$true] %s26_s15 }
   0x4   :  { %s638_s16 = scalar_lea.vmem %s18_s13, 512  ;;  %p643_p1 = scmp.lt.s32.totalorder %s18_s13, %s18_s13 }
   0x5   :  { %p639_p0 = scmp.ne.s32.totalorder %s18_s13, %s638_s16  ;;  %p644_p2 = scmp.lt.s32.totalorder %s638_s16, %s638_s16 }
   0x7   :  { %p645_p3 = por %p644_p2, %p643_p1 }
   0x9   :  { %p646_p4 = pnand %p645_p3, %p639_p0 }
   0xb   :  { %649 = shalt.err (!%p646_p4)
}
   0xc   :  { %20 = dma.hbm_to_vmem [thread:$0]  %s749_s0, 512, %s18_s13, [#allocation3]  }
   0xd   :  { %s658_s19 = scalar_lea.vmem %s27_s15, 24576  ;;  %p663_p6 = scmp.lt.s32.totalorder %s27_s15, %s27_s15 }
   0xe   :  { %p659_p5 = scmp.ne.s32.totalorder %s27_s15, %s658_s19  ;;  %p664_p7 = scmp.lt.s32.totalorder %s658_s19, %s658_s19 }
  0x10   :  { %p665_p8 = por %p664_p7, %p663_p6 }
  0x12   :  { %p666_p9 = pnand %p665_p8, %p659_p5 }
  0x14   :  { %669 = shalt.err (!%p666_p9)
}
  0x15   :  { %s698_s20 = smov 384   ;;  %s699_s21 = smov 24  }
  0x16   :  { %32 = dma.hbm_to_vmem [thread:$0]  %s750_s1, 24576, %s27_s15, [#allocation6], %s698_s20, %s698_s20, %s699_s21  }
  0x17   :  { %690 = dma.done.wait [#allocation3], 512  }
  0x18   :  { %691 = vsyncadd [#allocation3], 4294966784 }
  0x19   :  { %692 = dma.done.wait [#allocation6], 24576  }
  0x1a   :  { %693 = vsyncadd [#allocation6], 4294942720  ;;  %v91_v0 = vld [vmem:[#allocation5 + $0x170] sm:$0xff]  ;;  %v90_v2 = vld [vmem:[#allocation5 + $0x168] sm:$0xff] }
  0x1b   :  { %v187_v1 = vld [vmem:[#allocation5 + $0x470] sm:$0xff]  ;;  %254 = vmatprep.subr.mxu0 %v91_v0  ;;  %v186_v3 = vld [vmem:[#allocation5 + $0x468] sm:$0xff]  ;;  %v88_v4 = vld [vmem:[#allocation5 + $0x158] sm:$0xff] }
  0x1c   :  { %325 = vmatprep.subr.mxu1 %v187_v1  ;;  %v184_v5 = vld [vmem:[#allocation5 + $0x458] sm:$0xff]  ;;  %255 = vmatpush1.msra.mxu0 %v90_v2  ;;  %v87_v6 = vld [vmem:[#allocation5 + $0x150] sm:$0xff]  ;;  %v85_v8 = vld [vmem:[#allocation5 + $0x140] sm:$0xff] }
  0x1d   :  { %326 = vmatpush1.msra.mxu1 %v186_v3  ;;  %v183_v7 = vld [vmem:[#allocation5 + $0x450] sm:$0xff]  ;;  %256 = vmatprep.subr.mxu0 %v88_v4  ;;  %v181_v9 = vld [vmem:[#allocation5 + $0x440] sm:$0xff]  ;;  %v84_v10 = vld [vmem:[#allocation5 + $0x138] sm:$0xff] }
  0x1e   :  { %327 = vmatprep.subr.mxu1 %v184_v5  ;;  %v180_v11 = vld [vmem:[#allocation5 + $0x438] sm:$0xff]  ;;  %257 = vmatpush1.msra.mxu0 %v87_v6  ;;  %v82_v12 = vld [vmem:[#allocation5 + $0x128] sm:$0xff]  ;;  %v81_v14 = vld [vmem:[#allocation5 + $0x120] sm:$0xff] }
  0x1f   :  { %328 = vmatpush1.msra.mxu1 %v183_v7  ;;  %v178_v13 = vld [vmem:[#allocation5 + $0x428] sm:$0xff]  ;;  %258 = vmatprep.subr.mxu0 %v85_v8  ;;  %v177_v15 = vld [vmem:[#allocation5 + $0x420] sm:$0xff]  ;;  %v79_v16 = vld [vmem:[#allocation5 + $0x110] sm:$0xff] }
  0x20   :  { %329 = vmatprep.subr.mxu1 %v181_v9  ;;  %259 = vmatpush1.msra.mxu0 %v84_v10  ;;  %v175_v17 = vld [vmem:[#allocation5 + $0x410] sm:$0xff]  ;;  %v78_v18 = vld [vmem:[#allocation5 + $0x108] sm:$0xff]  ;;  %v76_v20 = vld [vmem:[#allocation5 + $0xf8] sm:$0xff] }
  0x21   :  { %330 = vmatpush1.msra.mxu1 %v180_v11  ;;  %260 = vmatprep.subr.mxu0 %v82_v12  ;;  %v174_v19 = vld [vmem:[#allocation5 + $0x408] sm:$0xff]  ;;  %v172_v21 = vld [vmem:[#allocation5 + $0x3f8] sm:$0xff]  ;;  %v75_v22 = vld [vmem:[#allocation5 + $0xf0] sm:$0xff] }
  0x22   :  { %331 = vmatprep.subr.mxu1 %v178_v13  ;;  %261 = vmatpush1.msra.mxu0 %v81_v14  ;;  %v171_v23 = vld [vmem:[#allocation5 + $0x3f0] sm:$0xff]  ;;  %v73_v24 = vld [vmem:[#allocation5 + $0xe0] sm:$0xff]  ;;  %v72_v26 = vld [vmem:[#allocation5 + $0xd8] sm:$0xff] }
  0x23   :  { %332 = vmatpush1.msra.mxu1 %v177_v15  ;;  %262 = vmatprep.subr.mxu0 %v79_v16  ;;  %v169_v25 = vld [vmem:[#allocation5 + $0x3e0] sm:$0xff]  ;;  %v168_v27 = vld [vmem:[#allocation5 + $0x3d8] sm:$0xff]  ;;  %v70_v28 = vld [vmem:[#allocation5 + $0xc8] sm:$0xff] }
  0x24   :  { %333 = vmatprep.subr.mxu1 %v175_v17  ;;  %263 = vmatpush1.msra.mxu0 %v78_v18  ;;  %v166_v29 = vld [vmem:[#allocation5 + $0x3c8] sm:$0xff]  ;;  %v69_v30 = vld [vmem:[#allocation5 + $0xc0] sm:$0xff]  ;;  %v67_v32 = vld [vmem:[#allocation5 + $0xb0] sm:$0xff] }
  0x25   :  { %334 = vmatpush1.msra.mxu1 %v174_v19  ;;  %264 = vmatprep.subr.mxu0 %v76_v20  ;;  %v165_v31 = vld [vmem:[#allocation5 + $0x3c0] sm:$0xff]  ;;  %v163_v33 = vld [vmem:[#allocation5 + $0x3b0] sm:$0xff]  ;;  %v66_v34 = vld [vmem:[#allocation5 + $0xa8] sm:$0xff] }
  0x26   :  { %335 = vmatprep.subr.mxu1 %v172_v21  ;;  %265 = vmatpush1.msra.mxu0 %v75_v22  ;;  %v162_v35 = vld [vmem:[#allocation5 + $0x3a8] sm:$0xff]  ;;  %v64_v36 = vld [vmem:[#allocation5 + $0x98] sm:$0xff]  ;;  %v63_v38 = vld [vmem:[#allocation5 + $0x90] sm:$0xff] }
  0x27   :  { %336 = vmatpush1.msra.mxu1 %v171_v23  ;;  %266 = vmatprep.subr.mxu0 %v73_v24  ;;  %v160_v37 = vld [vmem:[#allocation5 + $0x398] sm:$0xff]  ;;  %v159_v39 = vld [vmem:[#allocation5 + $0x390] sm:$0xff]  ;;  %v61_v40 = vld [vmem:[#allocation5 + $0x80] sm:$0xff] }
  0x28   :  { %337 = vmatprep.subr.mxu1 %v169_v25  ;;  %267 = vmatpush1.msra.mxu0 %v72_v26  ;;  %v157_v41 = vld [vmem:[#allocation5 + $0x380] sm:$0xff]  ;;  %v60_v42 = vld [vmem:[#allocation5 + $0x78] sm:$0xff]  ;;  %v58_v44 = vld [vmem:[#allocation5 + $0x68] sm:$0xff] }
  0x29   :  { %338 = vmatpush1.msra.mxu1 %v168_v27  ;;  %268 = vmatprep.subr.mxu0 %v70_v28  ;;  %v156_v43 = vld [vmem:[#allocation5 + $0x378] sm:$0xff]  ;;  %v154_v45 = vld [vmem:[#allocation5 + $0x368] sm:$0xff]  ;;  %v57_v46 = vld [vmem:[#allocation5 + $0x60] sm:$0xff] }
  0x2a   :  { %339 = vmatprep.subr.mxu1 %v166_v29  ;;  %269 = vmatpush1.msra.mxu0 %v69_v30  ;;  %v153_v47 = vld [vmem:[#allocation5 + $0x360] sm:$0xff]  ;;  %v55_v48 = vld [vmem:[#allocation5 + $0x50] sm:$0xff]  ;;  %v54_v50 = vld [vmem:[#allocation5 + $0x48] sm:$0xff] }
  0x2b   :  { %340 = vmatpush1.msra.mxu1 %v165_v31  ;;  %270 = vmatprep.subr.mxu0 %v67_v32  ;;  %v151_v49 = vld [vmem:[#allocation5 + $0x350] sm:$0xff]  ;;  %v150_v51 = vld [vmem:[#allocation5 + $0x348] sm:$0xff]  ;;  %v52_v52 = vld [vmem:[#allocation5 + $0x38] sm:$0xff] }
  0x2c   :  { %341 = vmatprep.subr.mxu1 %v163_v33  ;;  %271 = vmatpush1.msra.mxu0 %v66_v34  ;;  %v148_v53 = vld [vmem:[#allocation5 + $0x338] sm:$0xff]  ;;  %v51_v54 = vld [vmem:[#allocation5 + $0x30] sm:$0xff]  ;;  %v49_v56 = vld [vmem:[#allocation5 + $0x20] sm:$0xff] }
  0x2d   :  { %342 = vmatpush1.msra.mxu1 %v162_v35  ;;  %272 = vmatprep.subr.mxu0 %v64_v36  ;;  %v147_v55 = vld [vmem:[#allocation5 + $0x330] sm:$0xff]  ;;  %v145_v57 = vld [vmem:[#allocation5 + $0x320] sm:$0xff]  ;;  %v48_v58 = vld [vmem:[#allocation5 + $0x18] sm:$0xff] }
  0x2e   :  { %343 = vmatprep.subr.mxu1 %v160_v37  ;;  %273 = vmatpush1.msra.mxu0 %v63_v38  ;;  %v144_v59 = vld [vmem:[#allocation5 + $0x318] sm:$0xff]  ;;  %v46_v60 = vld [vmem:[#allocation5 + $0x8] sm:$0xff]  ;;  %v45_v62 = vld [vmem:[#allocation5] sm:$0xff] }
  0x2f   :  { %344 = vmatpush1.msra.mxu1 %v159_v39  ;;  %274 = vmatprep.subr.mxu0 %v61_v40  ;;  %v142_v61 = vld [vmem:[#allocation5 + $0x308] sm:$0xff]  ;;  %v141_v63 = vld [vmem:[#allocation5 + $0x300] sm:$0xff]  ;;  %v139_v0 = vld [vmem:[#allocation5 + $0x2f0] sm:$0xff] }
  0x30   :  { %345 = vmatprep.subr.mxu1 %v157_v41  ;;  %275 = vmatpush1.msra.mxu0 %v60_v42  ;;  %v235_v1 = vld [vmem:[#allocation5 + $0x5f0] sm:$0xff]  ;;  %v138_v2 = vld [vmem:[#allocation5 + $0x2e8] sm:$0xff]  ;;  %v136_v4 = vld [vmem:[#allocation5 + $0x2d8] sm:$0xff] }
  0x31   :  { %346 = vmatpush1.msra.mxu1 %v156_v43  ;;  %276 = vmatprep.subr.mxu0 %v58_v44  ;;  %v234_v3 = vld [vmem:[#allocation5 + $0x5e8] sm:$0xff]  ;;  %v232_v5 = vld [vmem:[#allocation5 + $0x5d8] sm:$0xff]  ;;  %v135_v6 = vld [vmem:[#allocation5 + $0x2d0] sm:$0xff] }
  0x32   :  { %347 = vmatprep.subr.mxu1 %v154_v45  ;;  %277 = vmatpush1.msra.mxu0 %v57_v46  ;;  %v231_v7 = vld [vmem:[#allocation5 + $0x5d0] sm:$0xff]  ;;  %v133_v8 = vld [vmem:[#allocation5 + $0x2c0] sm:$0xff]  ;;  %v132_v10 = vld [vmem:[#allocation5 + $0x2b8] sm:$0xff] }
  0x33   :  { %348 = vmatpush1.msra.mxu1 %v153_v47  ;;  %278 = vmatprep.subr.mxu0 %v55_v48  ;;  %v229_v9 = vld [vmem:[#allocation5 + $0x5c0] sm:$0xff]  ;;  %v228_v11 = vld [vmem:[#allocation5 + $0x5b8] sm:$0xff]  ;;  %v130_v12 = vld [vmem:[#allocation5 + $0x2a8] sm:$0xff] }
  0x34   :  { %349 = vmatprep.subr.mxu1 %v151_v49  ;;  %279 = vmatpush1.msra.mxu0 %v54_v50  ;;  %v226_v13 = vld [vmem:[#allocation5 + $0x5a8] sm:$0xff]  ;;  %v129_v14 = vld [vmem:[#allocation5 + $0x2a0] sm:$0xff]  ;;  %v127_v16 = vld [vmem:[#allocation5 + $0x290] sm:$0xff] }
  0x35   :  { %350 = vmatpush1.msra.mxu1 %v150_v51  ;;  %280 = vmatprep.subr.mxu0 %v52_v52  ;;  %v225_v15 = vld [vmem:[#allocation5 + $0x5a0] sm:$0xff]  ;;  %v223_v17 = vld [vmem:[#allocation5 + $0x590] sm:$0xff]  ;;  %v126_v18 = vld [vmem:[#allocation5 + $0x288] sm:$0xff] }
  0x36   :  { %351 = vmatprep.subr.mxu1 %v148_v53  ;;  %281 = vmatpush1.msra.mxu0 %v51_v54  ;;  %v222_v19 = vld [vmem:[#allocation5 + $0x588] sm:$0xff]  ;;  %v124_v20 = vld [vmem:[#allocation5 + $0x278] sm:$0xff]  ;;  %v123_v22 = vld [vmem:[#allocation5 + $0x270] sm:$0xff] }
  0x37   :  { %352 = vmatpush1.msra.mxu1 %v147_v55  ;;  %282 = vmatprep.subr.mxu0 %v49_v56  ;;  %v220_v21 = vld [vmem:[#allocation5 + $0x578] sm:$0xff]  ;;  %v219_v23 = vld [vmem:[#allocation5 + $0x570] sm:$0xff]  ;;  %v121_v24 = vld [vmem:[#allocation5 + $0x260] sm:$0xff] }
  0x38   :  { %353 = vmatprep.subr.mxu1 %v145_v57  ;;  %283 = vmatpush1.msra.mxu0 %v48_v58  ;;  %v217_v25 = vld [vmem:[#allocation5 + $0x560] sm:$0xff]  ;;  %v120_v26 = vld [vmem:[#allocation5 + $0x258] sm:$0xff]  ;;  %v118_v28 = vld [vmem:[#allocation5 + $0x248] sm:$0xff] }
  0x39   :  { %354 = vmatpush1.msra.mxu1 %v144_v59  ;;  %284 = vmatprep.subr.mxu0 %v46_v60  ;;  %v216_v27 = vld [vmem:[#allocation5 + $0x558] sm:$0xff]  ;;  %v214_v29 = vld [vmem:[#allocation5 + $0x548] sm:$0xff]  ;;  %v117_v30 = vld [vmem:[#allocation5 + $0x240] sm:$0xff] }
  0x3a   :  { %355 = vmatprep.subr.mxu1 %v142_v61  ;;  %285 = vmatpush1.msra.mxu0 %v45_v62  ;;  %v213_v31 = vld [vmem:[#allocation5 + $0x540] sm:$0xff]  ;;  %v115_v32 = vld [vmem:[#allocation5 + $0x230] sm:$0xff]  ;;  %v114_v34 = vld [vmem:[#allocation5 + $0x228] sm:$0xff] }
  0x3b   :  { %356 = vmatpush1.msra.mxu1 %v141_v63  ;;  %286 = vmatprep.subr.mxu0 %v139_v0  ;;  %v211_v33 = vld [vmem:[#allocation5 + $0x530] sm:$0xff]  ;;  %v210_v35 = vld [vmem:[#allocation5 + $0x528] sm:$0xff]  ;;  %v112_v36 = vld [vmem:[#allocation5 + $0x218] sm:$0xff] }
  0x3c   :  { %357 = vmatprep.subr.mxu1 %v235_v1  ;;  %287 = vmatpush2.msra.mxu0 %v138_v2  ;;  %v208_v37 = vld [vmem:[#allocation5 + $0x518] sm:$0xff]  ;;  %v111_v38 = vld [vmem:[#allocation5 + $0x210] sm:$0xff]  ;;  %v109_v40 = vld [vmem:[#allocation5 + $0x200] sm:$0xff] }
  0x3d   :  { %358 = vmatpush2.msra.mxu1 %v234_v3  ;;  %288 = vmatprep.subr.mxu0 %v136_v4  ;;  %v207_v39 = vld [vmem:[#allocation5 + $0x510] sm:$0xff]  ;;  %v205_v41 = vld [vmem:[#allocation5 + $0x500] sm:$0xff]  ;;  %v108_v42 = vld [vmem:[#allocation5 + $0x1f8] sm:$0xff] }
  0x3e   :  { %359 = vmatprep.subr.mxu1 %v232_v5  ;;  %289 = vmatpush2.msra.mxu0 %v135_v6  ;;  %v204_v43 = vld [vmem:[#allocation5 + $0x4f8] sm:$0xff]  ;;  %v106_v44 = vld [vmem:[#allocation5 + $0x1e8] sm:$0xff]  ;;  %v105_v46 = vld [vmem:[#allocation5 + $0x1e0] sm:$0xff] }
  0x3f   :  { %360 = vmatpush2.msra.mxu1 %v231_v7  ;;  %290 = vmatprep.subr.mxu0 %v133_v8  ;;  %v202_v45 = vld [vmem:[#allocation5 + $0x4e8] sm:$0xff]  ;;  %v201_v47 = vld [vmem:[#allocation5 + $0x4e0] sm:$0xff]  ;;  %v103_v48 = vld [vmem:[#allocation5 + $0x1d0] sm:$0xff] }
  0x40   :  { %361 = vmatprep.subr.mxu1 %v229_v9  ;;  %291 = vmatpush2.msra.mxu0 %v132_v10  ;;  %v199_v49 = vld [vmem:[#allocation5 + $0x4d0] sm:$0xff]  ;;  %v102_v50 = vld [vmem:[#allocation5 + $0x1c8] sm:$0xff]  ;;  %v100_v52 = vld [vmem:[#allocation5 + $0x1b8] sm:$0xff] }
  0x41   :  { %362 = vmatpush2.msra.mxu1 %v228_v11  ;;  %292 = vmatprep.subr.mxu0 %v130_v12  ;;  %v198_v51 = vld [vmem:[#allocation5 + $0x4c8] sm:$0xff]  ;;  %v196_v53 = vld [vmem:[#allocation5 + $0x4b8] sm:$0xff]  ;;  %v99_v54 = vld [vmem:[#allocation5 + $0x1b0] sm:$0xff] }
  0x42   :  { %363 = vmatprep.subr.mxu1 %v226_v13  ;;  %293 = vmatpush2.msra.mxu0 %v129_v14  ;;  %v195_v55 = vld [vmem:[#allocation5 + $0x4b0] sm:$0xff]  ;;  %v97_v56 = vld [vmem:[#allocation5 + $0x1a0] sm:$0xff]  ;;  %v96_v58 = vld [vmem:[#allocation5 + $0x198] sm:$0xff] }
  0x43   :  { %364 = vmatpush2.msra.mxu1 %v225_v15  ;;  %294 = vmatprep.subr.mxu0 %v127_v16  ;;  %v193_v57 = vld [vmem:[#allocation5 + $0x4a0] sm:$0xff]  ;;  %v192_v59 = vld [vmem:[#allocation5 + $0x498] sm:$0xff]  ;;  %v94_v60 = vld [vmem:[#allocation5 + $0x188] sm:$0xff] }
  0x44   :  { %365 = vmatprep.subr.mxu1 %v223_v17  ;;  %295 = vmatpush2.msra.mxu0 %v126_v18  ;;  %v190_v61 = vld [vmem:[#allocation5 + $0x488] sm:$0xff]  ;;  %v93_v62 = vld [vmem:[#allocation5 + $0x180] sm:$0xff]  ;;  %v731_v2 = vld [vmem:[#allocation2 + $0x18] sm:$0xff] }
  0x45   :  { %366 = vmatpush2.msra.mxu1 %v222_v19  ;;  %296 = vmatprep.subr.mxu0 %v124_v20  ;;  %v727_v63 = vld [vmem:[#allocation2 + $0x8] sm:$0xff]  ;;  %v189_v0 = vld [vmem:[#allocation5 + $0x480] sm:$0xff]  ;;  %v140_v3 = vld [vmem:[#allocation5 + $0x2f8] sm:$0xff] }
  0x46   :  { %367 = vmatprep.subr.mxu1 %v220_v21  ;;  %297 = vmatpush2.msra.mxu0 %v123_v22  ;;  %v729_v1 = vld [vmem:[#allocation2] sm:$0xff]  ;;  %v236_v4 = vld [vmem:[#allocation5 + $0x5f8] sm:$0xff]  ;;  %v734_v5 = vld [vmem:[#allocation2 + $0x10] sm:$0xff] }
  0x47   :  { %368 = vmatpush2.msra.mxu1 %v219_v23  ;;  %298 = vmatprep.subr.mxu0 %v121_v24  ;;  %v92_v6 = vld [vmem:[#allocation5 + $0x178] sm:$0xff]  ;;  %v137_v8 = vld [vmem:[#allocation5 + $0x2e0] sm:$0xff]  ;;  %v134_v12 = vld [vmem:[#allocation5 + $0x2c8] sm:$0xff] }
  0x48   :  { %369 = vmatprep.subr.mxu1 %v217_v25  ;;  %299 = vmatpush2.msra.mxu0 %v120_v26  ;;  %v188_v7 = vld [vmem:[#allocation5 + $0x478] sm:$0xff]  ;;  %v233_v9 = vld [vmem:[#allocation5 + $0x5e0] sm:$0xff]  ;;  %v230_v13 = vld [vmem:[#allocation5 + $0x5c8] sm:$0xff] }
  0x49   :  { %370 = vmatpush2.msra.mxu1 %v216_v27  ;;  %300 = vmatprep.subr.mxu0 %v118_v28  ;;  %v89_v10 = vld [vmem:[#allocation5 + $0x160] sm:$0xff]  ;;  %v86_v14 = vld [vmem:[#allocation5 + $0x148] sm:$0xff]  ;;  %v131_v16 = vld [vmem:[#allocation5 + $0x2b0] sm:$0xff] }
  0x4a   :  { %371 = vmatprep.subr.mxu1 %v214_v29  ;;  %301 = vmatpush2.msra.mxu0 %v117_v30  ;;  %v185_v11 = vld [vmem:[#allocation5 + $0x460] sm:$0xff]  ;;  %v182_v15 = vld [vmem:[#allocation5 + $0x448] sm:$0xff]  ;;  %v227_v17 = vld [vmem:[#allocation5 + $0x5b0] sm:$0xff] }
  0x4b   :  { %372 = vmatpush2.msra.mxu1 %v213_v31  ;;  %302 = vmatprep.subr.mxu0 %v115_v32  ;;  %v83_v18 = vld [vmem:[#allocation5 + $0x130] sm:$0xff]  ;;  %v128_v20 = vld [vmem:[#allocation5 + $0x298] sm:$0xff]  ;;  %v125_v24 = vld [vmem:[#allocation5 + $0x280] sm:$0xff] }
  0x4c   :  { %373 = vmatprep.subr.mxu1 %v211_v33  ;;  %303 = vmatpush2.msra.mxu0 %v114_v34  ;;  %v179_v19 = vld [vmem:[#allocation5 + $0x430] sm:$0xff]  ;;  %v224_v21 = vld [vmem:[#allocation5 + $0x598] sm:$0xff]  ;;  %v221_v25 = vld [vmem:[#allocation5 + $0x580] sm:$0xff] }
  0x4d   :  { %374 = vmatpush2.msra.mxu1 %v210_v35  ;;  %304 = vmatprep.subr.mxu0 %v112_v36  ;;  %v80_v22 = vld [vmem:[#allocation5 + $0x118] sm:$0xff]  ;;  %v77_v26 = vld [vmem:[#allocation5 + $0x100] sm:$0xff]  ;;  %v122_v28 = vld [vmem:[#allocation5 + $0x268] sm:$0xff] }
  0x4e   :  { %375 = vmatprep.subr.mxu1 %v208_v37  ;;  %305 = vmatpush2.msra.mxu0 %v111_v38  ;;  %v176_v23 = vld [vmem:[#allocation5 + $0x418] sm:$0xff]  ;;  %v173_v27 = vld [vmem:[#allocation5 + $0x400] sm:$0xff]  ;;  %v218_v29 = vld [vmem:[#allocation5 + $0x568] sm:$0xff] }
  0x4f   :  { %376 = vmatpush2.msra.mxu1 %v207_v39  ;;  %306 = vmatprep.subr.mxu0 %v109_v40  ;;  %v74_v30 = vld [vmem:[#allocation5 + $0xe8] sm:$0xff]  ;;  %v119_v32 = vld [vmem:[#allocation5 + $0x250] sm:$0xff]  ;;  %v116_v36 = vld [vmem:[#allocation5 + $0x238] sm:$0xff] }
  0x50   :  { %377 = vmatprep.subr.mxu1 %v205_v41  ;;  %307 = vmatpush2.msra.mxu0 %v108_v42  ;;  %v170_v31 = vld [vmem:[#allocation5 + $0x3e8] sm:$0xff]  ;;  %v215_v33 = vld [vmem:[#allocation5 + $0x550] sm:$0xff]  ;;  %v212_v37 = vld [vmem:[#allocation5 + $0x538] sm:$0xff] }
  0x51   :  { %378 = vmatpush2.msra.mxu1 %v204_v43  ;;  %308 = vmatprep.subr.mxu0 %v106_v44  ;;  %v71_v34 = vld [vmem:[#allocation5 + $0xd0] sm:$0xff]  ;;  %v68_v38 = vld [vmem:[#allocation5 + $0xb8] sm:$0xff]  ;;  %v113_v40 = vld [vmem:[#allocation5 + $0x220] sm:$0xff] }
  0x52   :  { %379 = vmatprep.subr.mxu1 %v202_v45  ;;  %309 = vmatpush2.msra.mxu0 %v105_v46  ;;  %v167_v35 = vld [vmem:[#allocation5 + $0x3d0] sm:$0xff]  ;;  %v164_v39 = vld [vmem:[#allocation5 + $0x3b8] sm:$0xff]  ;;  %v209_v41 = vld [vmem:[#allocation5 + $0x520] sm:$0xff] }
  0x53   :  { %380 = vmatpush2.msra.mxu1 %v201_v47  ;;  %310 = vmatprep.subr.mxu0 %v103_v48  ;;  %v65_v42 = vld [vmem:[#allocation5 + $0xa0] sm:$0xff]  ;;  %v110_v44 = vld [vmem:[#allocation5 + $0x208] sm:$0xff]  ;;  %v107_v48 = vld [vmem:[#allocation5 + $0x1f0] sm:$0xff] }
  0x54   :  { %381 = vmatprep.subr.mxu1 %v199_v49  ;;  %311 = vmatpush2.msra.mxu0 %v102_v50  ;;  %v161_v43 = vld [vmem:[#allocation5 + $0x3a0] sm:$0xff]  ;;  %v206_v45 = vld [vmem:[#allocation5 + $0x508] sm:$0xff]  ;;  %v203_v49 = vld [vmem:[#allocation5 + $0x4f0] sm:$0xff] }
  0x55   :  { %382 = vmatpush2.msra.mxu1 %v198_v51  ;;  %312 = vmatprep.subr.mxu0 %v100_v52  ;;  %v62_v46 = vld [vmem:[#allocation5 + $0x88] sm:$0xff]  ;;  %v59_v50 = vld [vmem:[#allocation5 + $0x70] sm:$0xff]  ;;  %v104_v52 = vld [vmem:[#allocation5 + $0x1d8] sm:$0xff] }
  0x56   :  { %383 = vmatprep.subr.mxu1 %v196_v53  ;;  %313 = vmatpush2.msra.mxu0 %v99_v54  ;;  %v158_v47 = vld [vmem:[#allocation5 + $0x388] sm:$0xff]  ;;  %v155_v51 = vld [vmem:[#allocation5 + $0x370] sm:$0xff]  ;;  %v200_v53 = vld [vmem:[#allocation5 + $0x4d8] sm:$0xff] }
  0x57   :  { %384 = vmatpush2.msra.mxu1 %v195_v55  ;;  %314 = vmatprep.subr.mxu0 %v97_v56  ;;  %v56_v54 = vld [vmem:[#allocation5 + $0x58] sm:$0xff]  ;;  %v101_v56 = vld [vmem:[#allocation5 + $0x1c0] sm:$0xff] }
  0x58   :  { %385 = vmatprep.subr.mxu1 %v193_v57  ;;  %315 = vmatpush2.msra.mxu0 %v96_v58  ;;  %v152_v55 = vld [vmem:[#allocation5 + $0x358] sm:$0xff]  ;;  %v197_v57 = vld [vmem:[#allocation5 + $0x4c0] sm:$0xff] }
  0x59   :  { %386 = vmatpush2.msra.mxu1 %v192_v59  ;;  %316 = vmatprep.subr.mxu0 %v94_v60  ;;  %v53_v58 = vld [vmem:[#allocation5 + $0x40] sm:$0xff]  ;;  %v98_v60 = vld [vmem:[#allocation5 + $0x1a8] sm:$0xff] }
  0x5a   :  { %387 = vmatprep.subr.mxu1 %v190_v61  ;;  %317 = vmatpush2.msra.mxu0 %v93_v62  ;;  %v149_v59 = vld [vmem:[#allocation5 + $0x340] sm:$0xff]  ;;  %v194_v61 = vld [vmem:[#allocation5 + $0x4a8] sm:$0xff] }
  0x5b   :  { %318 = vmatprep.mubr.f32.mxu0 %v727_v63  ;;  %388 = vmatpush2.msra.mxu1 %v189_v0  ;;  %v50_v62 = vld [vmem:[#allocation5 + $0x28] sm:$0xff] }
  0x5c   :  { %319 = vmatmul.mubr.f32.vlgmr.msra.gmra.mxu0 %v729_v1  ;;  %389 = vmatprep.mubr.f32.mxu1 %v731_v2  ;;  %v146_v0 = vld [vmem:[#allocation5 + $0x328] sm:$0xff] }
  0x5d   :  { %555 = vmatprep.subr.mxu0 %v140_v3  ;;  %590 = vmatprep.subr.mxu1 %v236_v4  ;;  %v95_v3 = vld [vmem:[#allocation5 + $0x190] sm:$0xff] }
  0x5e   :  { %390 = vmatmul.mubr.f32.vlgmr.msra.gmra.mxu1 %v734_v5  ;;  %556 = vmatpush3.msra.mxu0 %v92_v6  ;;  %v191_v4 = vld [vmem:[#allocation5 + $0x490] sm:$0xff] }
  0x5f   :  { %591 = vmatpush3.msra.mxu1 %v188_v7  ;;  %557 = vmatprep.subr.mxu0 %v137_v8  ;;  %v47_v6 = vld [vmem:[#allocation5 + $0x10] sm:$0xff]  ;;  %v239_v8 = vlaneseq }
  0x60   :  { %592 = vmatprep.subr.mxu1 %v233_v9  ;;  %558 = vmatpush3.msra.mxu0 %v89_v10  ;;  %v143_v7 = vld [vmem:[#allocation5 + $0x310] sm:$0xff] }
  0x61   :  { %593 = vmatpush3.msra.mxu1 %v185_v11  ;;  %559 = vmatprep.subr.mxu0 %v134_v12  ;;  %v240_v9 = vshrl.u32 %v239_v8, 7  ;;  %v237_v11 = vld [vmem:[%s751_s2] sm:$0x7]  ;;  %s700_s2 = smov [#allocation7]  }
  0x62   :  { %594 = vmatprep.subr.mxu1 %v230_v13  ;;  %560 = vmatpush3.msra.mxu0 %v86_v14  ;;  %s545_s24 = sshll.u32 %s700_s2, 4  ;;  %s546_s24 = int_to_ptr.vmem [resolvable:$true] %s545_s24 }
  0x63   :  { %595 = vmatpush3.msra.mxu1 %v182_v15  ;;  %561 = vmatprep.subr.mxu0 %v131_v16  ;;  %v241_v10 = vsub.s32 0, %v240_v9  ;;  %v245_v12 = vsub.s32 1, %v240_v9  ;;  %s670_s25 = scalar_lea.vmem %s546_s24, 384  ;;  %p675_p11 = scmp.lt.s32.totalorder %s546_s24, %s546_s24 }
  0x64   :  { %596 = vmatprep.subr.mxu1 %v227_v17  ;;  %562 = vmatpush3.msra.mxu0 %v83_v18  ;;  %p671_p10 = scmp.ne.s32.totalorder %s546_s24, %s670_s25  ;;  %p676_p12 = scmp.lt.s32.totalorder %s670_s25, %s670_s25 }
  0x65   :  { %597 = vmatpush3.msra.mxu1 %v179_v19  ;;  %563 = vmatprep.subr.mxu0 %v128_v20  ;;  %v242_v13 = vrot.slane %v237_v11, %v241_v10  ;;  %v246_v14 = vrot.slane %v237_v11, %v245_v12 }
  0x66   :  { %598 = vmatprep.subr.mxu1 %v224_v21  ;;  %564 = vmatpush3.msra.mxu0 %v80_v22  ;;  %p677_p13 = por %p676_p12, %p675_p11 }
  0x67   :  { %599 = vmatpush3.msra.mxu1 %v176_v23  ;;  %565 = vmatprep.subr.mxu0 %v125_v24 }
  0x68   :  { %600 = vmatprep.subr.mxu1 %v221_v25  ;;  %566 = vmatpush3.msra.mxu0 %v77_v26  ;;  %p678_p0 = pnand %p677_p13, %p671_p10 }
  0x69   :  { %601 = vmatpush3.msra.mxu1 %v173_v27  ;;  %567 = vmatprep.subr.mxu0 %v122_v28 }
  0x6a   :  { %602 = vmatprep.subr.mxu1 %v218_v29  ;;  %568 = vmatpush3.msra.mxu0 %v74_v30 }
  0x6b   :  { %603 = vmatpush3.msra.mxu1 %v170_v31  ;;  %569 = vmatprep.subr.mxu0 %v119_v32 }
  0x6c   :  { %604 = vmatprep.subr.mxu1 %v215_v33  ;;  %570 = vmatpush3.msra.mxu0 %v71_v34 }
  0x6d   :  { %605 = vmatpush3.msra.mxu1 %v167_v35  ;;  %571 = vmatprep.subr.mxu0 %v116_v36 }
  0x6e   :  { %606 = vmatprep.subr.mxu1 %v212_v37  ;;  %572 = vmatpush3.msra.mxu0 %v68_v38 }
  0x6f   :  { %607 = vmatpush3.msra.mxu1 %v164_v39  ;;  %573 = vmatprep.subr.mxu0 %v113_v40 }
  0x70   :  { %608 = vmatprep.subr.mxu1 %v209_v41  ;;  %574 = vmatpush3.msra.mxu0 %v65_v42 }
  0x71   :  { %609 = vmatpush3.msra.mxu1 %v161_v43  ;;  %575 = vmatprep.subr.mxu0 %v110_v44 }
  0x72   :  { %610 = vmatprep.subr.mxu1 %v206_v45  ;;  %576 = vmatpush3.msra.mxu0 %v62_v46 }
  0x73   :  { %611 = vmatpush3.msra.mxu1 %v158_v47  ;;  %577 = vmatprep.subr.mxu0 %v107_v48 }
  0x74   :  { %612 = vmatprep.subr.mxu1 %v203_v49  ;;  %578 = vmatpush3.msra.mxu0 %v59_v50 }
  0x75   :  { %613 = vmatpush3.msra.mxu1 %v155_v51  ;;  %579 = vmatprep.subr.mxu0 %v104_v52 }
  0x76   :  { %614 = vmatprep.subr.mxu1 %v200_v53  ;;  %580 = vmatpush3.msra.mxu0 %v56_v54 }
  0x77   :  { %615 = vmatpush3.msra.mxu1 %v152_v55  ;;  %581 = vmatprep.subr.mxu0 %v101_v56 }
  0x78   :  { %616 = vmatprep.subr.mxu1 %v197_v57  ;;  %582 = vmatpush3.msra.mxu0 %v53_v58 }
  0x79   :  { %617 = vmatpush3.msra.mxu1 %v149_v59  ;;  %583 = vmatprep.subr.mxu0 %v98_v60 }
  0x7a   :  { %618 = vmatprep.subr.mxu1 %v194_v61  ;;  %584 = vmatpush3.msra.mxu0 %v50_v62 }
  0x7b   :  { %619 = vmatpush3.msra.mxu1 %v146_v0  ;;  %585 = vmatprep.subr.mxu0 %v95_v3 }
  0x7c   :  { %620 = vmatprep.subr.mxu1 %v191_v4  ;;  %586 = vmatpush3.msra.mxu0 %v47_v6 }
  0x7d   :  { %460 = vmatprep.mubr.f32.mxu0 %v727_v63  ;;  %621 = vmatpush3.msra.mxu1 %v143_v7 }
  0x7e   :  { %530 = vmatprep.mubr.f32.mxu1 %v731_v2  ;;  %461 = vmatmul.mubr.f32.vlgmr.msra.gmra.mxu0 %v729_v1 }
  0x7f   :  { %531 = vmatmul.mubr.f32.vlgmr.msra.gmra.mxu1 %v734_v5  ;;  %v249_v5 = vsub.s32 2, %v240_v9 }
  0x81   :  { %v250_v22 = vrot.slane %v237_v11, %v249_v5 }
 0x11c   :  { %v320_v15 = vpop.f32.mrf.mxu0 }
 0x11d   :  { %v321_v16 = vadd.f32 %v320_v15, %v242_v13 }
 0x11e   :  { %v391_v63 = vpop.f32.mrf.mxu1  ;;  %v322_v17 = vpop.f32.mrf.mxu0 }
 0x11f   :  { %v392_v18 = vadd.f32 %v391_v63, %v321_v16  ;;  %v323_v2 = vadd.f32 %v322_v17, %v246_v14 }
 0x120   :  { %v393_v19 = vpop.f32.mrf.mxu1 }
 0x121   :  { %536 = vst [vmem:[#allocation7] sm:$0xff] %v392_v18  ;;  %v394_v1 = vadd.f32 %v393_v19, %v323_v2 }
 0x123   :  { %537 = vst [vmem:[#allocation7 + $0x8] sm:$0xff] %v394_v1 }
 0x13e   :  { %v587_v20 = vpop.f32.mrf.mxu0 }
 0x13f   :  { %v622_v21 = vpop.f32.mrf.mxu1 }
 0x140   :  { %v588_v23 = vpop.f32.mrf.mxu0 }
 0x141   :  { %v623_v24 = vpop.f32.mrf.mxu1  ;;  %v589_v25 = vadd.f32 %v588_v23, %v587_v20 }
 0x142   :  { %v624_v27 = vadd.f32 %v623_v24, %v622_v21 }
 0x143   :  { %v463_v26 = vadd.f32 %v589_v25, %v250_v22 }
 0x145   :  { %v533_v28 = vadd.f32 %v624_v27, %v463_v26 }
 0x147   :  { %538 = vst [vmem:[#allocation7 + $0x10] sm:$0xff] %v533_v28 }
 0x148   :  { %681 = shalt.err (!%p678_p0)
}
 0x149   :  { %548 = dma.vmem_to_hbm [thread:$0]  %s546_s24, 384, %s752_s3, [#allocation4]  }
 0x14a   :  { %694 = dma.done.wait [#allocation4], 384  }
 0x14b   :  { %695 = vsyncadd [#allocation4], 4294966912 }
 0x14c   :  { %552 = vsyncpa [#allocation3], 1 }
 0x14d   :  { %553 = vsyncpa [#allocation6], 1 }
 0x14e   :  { %554 = vsyncpa [#allocation4], 1 }

</bundles_post_ra>
